<compile_context>
chip_gen: v7x
topology: tpu7x:2x2x1
jax: 0.10.0
libtpu: 0.0.40
codegen_flags: <defaults>
</compile_context>

<pallas_src>
import functools

import jax
import jax.numpy as jnp
from jax.experimental import pallas as pl
from jax.experimental.pallas import tpu as pltpu


_TARGET_GRID_STEPS = 4  # >=2 steps/core on v7x, pipeline overlap on v5e/v6e


# ---------------------------------------------------------------------------
# Single-pass kernel: one (TB, C, L) slab per grid step.
# ---------------------------------------------------------------------------
def _se_kernel(x_ref, w1t_ref, w2t_ref, o_ref):
    # x_ref / o_ref block: (TB, C, L); w1t: (C, H); w2t: (H, C)
    # Squeeze: mean over L, accumulated in f32.
    pooled = jnp.mean(x_ref[...], axis=-1, dtype=jnp.float32)            # (TB, C)
    # Excite: fc1 -> ReLU -> fc2 -> sigmoid, batched over the TB rows.
    h = jnp.maximum(
        jnp.dot(pooled, w1t_ref[...], preferred_element_type=jnp.float32), 0.0)
    y = jax.nn.sigmoid(
        jnp.dot(h, w2t_ref[...], preferred_element_type=jnp.float32))    # (TB, C)
    # Scale: re-read x from VMEM (don't keep the slab live across the MLP).
    o_ref[...] = x_ref[...] * y.astype(o_ref.dtype)[:, :, None]


# ---------------------------------------------------------------------------
# Two-pass fallback kernels (L-tiled): pass 1 gates, pass 2 apply.
# ---------------------------------------------------------------------------
def _se_gates_kernel(x_ref, w1t_ref, w2t_ref, y_ref, acc_ref, *,
                     true_l, tile_l, mask_l):
    li = pl.program_id(1)

    @pl.when(li == 0)
    def _():
        acc_ref[...] = jnp.zeros_like(acc_ref)

    x = x_ref[...].astype(jnp.float32)                                   # (TB, C, TL)
    if mask_l:
        # Mask lanes past the true L in the (padded) last tile.
        col = jax.lax.broadcasted_iota(jnp.int32, x.shape, 2) + li * tile_l
        x = jnp.where(col < true_l, x, 0.0)
    acc_ref[...] += jnp.sum(x, axis=-1)                                  # (TB, C)

    @pl.when(li == pl.num_programs(1) - 1)
    def _():
        pooled = acc_ref[...] * (1.0 / true_l)
        h = jnp.maximum(
            jnp.dot(pooled, w1t_ref[...], preferred_element_type=jnp.float32), 0.0)
        y = jax.nn.sigmoid(
            jnp.dot(h, w2t_ref[...], preferred_element_type=jnp.float32))
        y_ref[...] = y[:, :, None]                                       # (TB, C, 1)


def _se_apply_kernel(x_ref, y_ref, o_ref):
    # x/o block: (TB, C, TL); y block: (TB, C, 1) broadcasts over lanes.
    o_ref[...] = x_ref[...] * y_ref[...].astype(o_ref.dtype)


# ---------------------------------------------------------------------------
# VMEM budgeting (chip-derived)
# ---------------------------------------------------------------------------
def _vmem_capacity_bytes():
    """Per-core physical VMEM queried from the chip; conservative fallback."""
    try:
        info = pltpu.get_tpu_info()
        cap = getattr(info, "vmem_capacity_bytes", None)
        if cap:
            return int(cap)
    except Exception:
        pass
    return 64 * 1024 * 1024  # conservative (v7x per-TC); v5e/v6e have 128 MiB


def _budgets(block_budget_override=None):
    cap = _vmem_capacity_bytes()
    vmem_limit = (cap * 3) // 4            # ~25% headroom vs physical
    block_budget = (vmem_limit * 4) // 5   # ~20% more for weights / scratch / compiler
    if block_budget_override is not None:
        block_budget = int(block_budget_override)
    return int(vmem_limit), int(block_budget)


# ---------------------------------------------------------------------------
# Wrappers
# ---------------------------------------------------------------------------
def _se_single_pass(x, w1t, w2t, vmem_limit, block_budget):
    B, C, L = x.shape
    H = w1t.shape[1]
    elt = x.dtype.itemsize

    # x block + out block, each double-buffered -> 4 copies per batch row.
    per_row = 4 * C * L * elt
    max_tb = max(1, block_budget // per_row)
    tb = int(max(1, min(max_tb, pl.cdiv(B, _TARGET_GRID_STEPS))))
    grid_b = pl.cdiv(B, tb)

    cost = pl.CostEstimate(
        flops=2 * B * C * L + 4 * B * C * H,
        transcendentals=B * C,
        bytes_accessed=2 * B * C * L * elt + 2 * C * H * 4,
    )
    return pl.pallas_call(
        _se_kernel,
        out_shape=jax.ShapeDtypeStruct((B, C, L), x.dtype),
        grid_spec=pltpu.PrefetchScalarGridSpec(
            num_scalar_prefetch=0,
            grid=(grid_b,),
            in_specs=[
                pl.BlockSpec((tb, C, L), lambda b: (b, 0, 0)),
                pl.BlockSpec((C, H), lambda b: (0, 0)),
                pl.BlockSpec((H, C), lambda b: (0, 0)),
            ],
            out_specs=pl.BlockSpec((tb, C, L), lambda b: (b, 0, 0)),
        ),
        compiler_params=pltpu.CompilerParams(
            dimension_semantics=("parallel",),
            vmem_limit_bytes=vmem_limit,
        ),
        cost_estimate=cost,
    )(x, w1t, w2t)


def _se_two_pass(x, w1t, w2t, vmem_limit, block_budget):
    B, C, L = x.shape
    H = w1t.shape[1]
    elt = x.dtype.itemsize

    # Lane tile: a multiple of 128 (lane-dense stores) sized to the budget.
    if L <= 128:
        tl = L  # equals the full array dim -> always legal
    else:
        tl_cap = (L // 128) * 128                                # largest 128-mult <= L
        tl_fit = max(128, (block_budget // (4 * C * elt)) // 128 * 128)
        tl = int(min(tl_cap, tl_fit))
    # TODO(synk): if even (1, C, 128) exceeds the budget (enormous C), tile C as well.

    max_tb = max(1, block_budget // (4 * C * tl * elt))
    tb = int(max(1, min(max_tb, pl.cdiv(B, 2))))                 # >=2 batch blocks for v7x
    grid_b = pl.cdiv(B, tb)
    grid_l = pl.cdiv(L, tl)

    # Pass 1: pooled mean (reduction over the innermost L grid axis) -> gates.
    gates = pl.pallas_call(
        functools.partial(_se_gates_kernel, true_l=L, tile_l=tl,
                          mask_l=(L % tl != 0)),
        out_shape=jax.ShapeDtypeStruct((B, C, 1), jnp.float32),
        grid_spec=pltpu.PrefetchScalarGridSpec(
            num_scalar_prefetch=0,
            grid=(grid_b, grid_l),
            in_specs=[
                pl.BlockSpec((tb, C, tl), lambda b, l: (b, 0, l)),
                pl.BlockSpec((C, H), lambda b, l: (0, 0)),
                pl.BlockSpec((H, C), lambda b, l: (0, 0)),
            ],
            out_specs=pl.BlockSpec((tb, C, 1), lambda b, l: (b, 0, 0)),
            scratch_shapes=[pltpu.VMEM((tb, C), jnp.float32)],
        ),
        compiler_params=pltpu.CompilerParams(
            dimension_semantics=("parallel", "arbitrary"),
            vmem_limit_bytes=vmem_limit,
        ),
        cost_estimate=pl.CostEstimate(
            flops=B * C * L + 4 * B * C * H,
            transcendentals=B * C,
            bytes_accessed=B * C * L * elt + B * C * 4 + 2 * C * H * 4,
        ),
    )(x, w1t, w2t)

    # Pass 2: re-read x and apply the per-channel gate.
    return pl.pallas_call(
        _se_apply_kernel,
        out_shape=jax.ShapeDtypeStruct((B, C, L), x.dtype),
        grid_spec=pltpu.PrefetchScalarGridSpec(
            num_scalar_prefetch=0,
            grid=(grid_b, grid_l),
            in_specs=[
                pl.BlockSpec((tb, C, tl), lambda b, l: (b, 0, l)),
                pl.BlockSpec((tb, C, 1), lambda b, l: (b, 0, 0)),
            ],
            out_specs=pl.BlockSpec((tb, C, tl), lambda b, l: (b, 0, l)),
        ),
        compiler_params=pltpu.CompilerParams(
            dimension_semantics=("parallel", "parallel"),
            vmem_limit_bytes=vmem_limit,
        ),
        cost_estimate=pl.CostEstimate(
            flops=B * C * L,
            transcendentals=0,
            bytes_accessed=2 * B * C * L * elt + B * C * 4,
        ),
    )(x, gates)


def se_layer(x, w1, w2, *, block_budget_override=None):
    """x: (B, C, L); w1: (C//r, C); w2: (C, C//r) (PyTorch Linear weight layout, no bias)."""
    B, C, L = x.shape
    elt = x.dtype.itemsize
    # Pre-transpose the tiny weights once so the in-kernel matmuls are row-major.
    w1t = w1.T  # (C, H)
    w2t = w2.T  # (H, C)

    vmem_limit, block_budget = _budgets(block_budget_override)
    if 4 * C * L * elt <= block_budget:
        return _se_single_pass(x, w1t, w2t, vmem_limit, block_budget)
    # One batch row doesn't fit: L-tiled two-pass fallback (~1.5x HBM traffic).
    return _se_two_pass(x, w1t, w2t, vmem_limit, block_budget)


def se_layer_ref(x, w1, w2):
    """Pure-JAX reference matching the PyTorch forward."""
    pooled = jnp.mean(x.astype(jnp.float32), axis=-1)              # (B, C)
    h = jnp.maximum(pooled @ w1.T.astype(jnp.float32), 0.0)        # (B, H)
    y = jax.nn.sigmoid(h @ w2.T.astype(jnp.float32))               # (B, C)
    return (x * y.astype(x.dtype)[:, :, None]).astype(x.dtype)


def _check(x, w1, w2, **kw):
    out = jax.block_until_ready(se_layer(x, w1, w2, **kw))
    ref = se_layer_ref(x, w1, w2)
    assert out.shape == x.shape and out.dtype == x.dtype
    assert jnp.allclose(out, ref, atol=1e-4, rtol=1e-4), "mismatch vs reference"


if __name__ == "__main__":
    reduction = 16
    key = jax.random.PRNGKey(0)
    kx, k1, k2, kx2 = jax.random.split(key, 4)

    B, C, L = 5, 64, 256
    H = C // reduction
    x = jax.random.normal(kx, (B, C, L), dtype=jnp.float32)
    # PyTorch Linear weight shapes: (out_features, in_features), no bias.
    w1 = jax.random.normal(k1, (H, C), dtype=jnp.float32) * (1.0 / jnp.sqrt(C))
    w2 = jax.random.normal(k2, (C, H), dtype=jnp.float32) * (1.0 / jnp.sqrt(H))

    # 1) Primary single-pass path: ragged batch (B=5, TB=2), lane-dense L.
    _check(x, w1, w2)

    # 2) Two-pass fallback, forced via a tiny block budget (L-tiled pooling).
    _check(x, w1, w2, block_budget_override=128 * 1024)

    # 3) Two-pass fallback with ragged L (192 not a multiple of the 128 lane tile).
    x2 = jax.random.normal(kx2, (3, C, 192), dtype=jnp.float32)
    _check(x2, w1, w2, block_budget_override=128 * 1024)

    print("KERNEL_OK")
</pallas_src>

<mosaic_0001>
module attributes {stable_mosaic.version = 11 : i64} {
  func.func @_se_kernel(%arg0: i32, %arg1: memref<2x64x256xf32, #tpu.memory_space<vmem>>, %arg2: memref<64x4xf32, #tpu.memory_space<vmem>>, %arg3: memref<4x64xf32, #tpu.memory_space<vmem>>, %arg4: memref<2x64x256xf32, #tpu.memory_space<vmem>>) attributes {dimension_semantics = [#tpu.dimension_semantics<parallel>], iteration_bounds = array<i64: 3>, scalar_prefetch = 0 : i64, scratch_operands = 0 : i64, tpu.core_type = #tpu.core_type<tc>, window_params = [{transform_indices = @transform_0, window_bounds = array<i64: 2, 64, 256>}, {pipeline_mode = #tpu.pipeline_mode<synchronous>, transform_indices = @transform_1, window_bounds = array<i64: 64, 4>}, {pipeline_mode = #tpu.pipeline_mode<synchronous>, transform_indices = @transform_2, window_bounds = array<i64: 4, 64>}, {transform_indices = @transform_3, window_bounds = array<i64: 2, 64, 256>}]} {
    %c0 = arith.constant 0 : index
    %c0_0 = arith.constant 0 : index
    %c0_1 = arith.constant 0 : index
    %0 = vector.load %arg1[%c0, %c0_0, %c0_1] : memref<2x64x256xf32, #tpu.memory_space<vmem>>, vector<2x64x256xf32>
    %cst = arith.constant dense<0.000000e+00> : vector<2x64xf32>
    %1 = vector.multi_reduction <add>, %0, %cst [2] : vector<2x64x256xf32> to vector<2x64xf32>
    %cst_2 = arith.constant 2.560000e+02 : f32
    %2 = vector.broadcast %cst_2 : f32 to vector<2x64xf32>
    %3 = arith.divf %1, %2 : vector<2x64xf32>
    %c0_3 = arith.constant 0 : index
    %c0_4 = arith.constant 0 : index
    %4 = vector.load %arg2[%c0_3, %c0_4] : memref<64x4xf32, #tpu.memory_space<vmem>>, vector<64x4xf32>
    %cst_5 = arith.constant dense<0.000000e+00> : vector<2x4xf32>
    %5 = tpu.matmul %3, %4, %cst_5 {dimension_numbers = #tpu.dot_dimension_numbers<[1], [0], [0], [1], [0, 0, 1, 1], [], []>} : vector<2x64xf32>, vector<64x4xf32>, vector<2x4xf32> -> vector<2x4xf32>
    %cst_6 = arith.constant 0.000000e+00 : f32
    %6 = vector.broadcast %cst_6 : f32 to vector<2x4xf32>
    %7 = arith.maximumf %5, %6 : vector<2x4xf32>
    %c0_7 = arith.constant 0 : index
    %c0_8 = arith.constant 0 : index
    %8 = vector.load %arg3[%c0_7, %c0_8] : memref<4x64xf32, #tpu.memory_space<vmem>>, vector<4x64xf32>
    %cst_9 = arith.constant dense<0.000000e+00> : vector<2x64xf32>
    %9 = tpu.matmul %7, %8, %cst_9 {dimension_numbers = #tpu.dot_dimension_numbers<[1], [0], [0], [1], [0, 0, 1, 1], [], []>} : vector<2x4xf32>, vector<4x64xf32>, vector<2x64xf32> -> vector<2x64xf32>
    %10 = arith.negf %9 : vector<2x64xf32>
    %11 = math.exp %10 : vector<2x64xf32>
    %cst_10 = arith.constant 1.000000e+00 : f32
    %12 = vector.broadcast %cst_10 : f32 to vector<2x64xf32>
    %13 = arith.addf %12, %11 : vector<2x64xf32>
    %14 = arith.divf %12, %13 : vector<2x64xf32>
    %c0_11 = arith.constant 0 : index
    %c0_12 = arith.constant 0 : index
    %c0_13 = arith.constant 0 : index
    %15 = vector.load %arg1[%c0_11, %c0_12, %c0_13] : memref<2x64x256xf32, #tpu.memory_space<vmem>>, vector<2x64x256xf32>
    %16 = vector.shape_cast %14 : vector<2x64xf32> to vector<2x64x1xf32>
    %17 = vector.broadcast %16 : vector<2x64x1xf32> to vector<2x64x256xf32>
    %18 = arith.mulf %15, %17 : vector<2x64x256xf32>
    %c0_14 = arith.constant 0 : index
    %c0_15 = arith.constant 0 : index
    %c0_16 = arith.constant 0 : index
    %19 = vector.load %arg4[%c0_14, %c0_15, %c0_16] : memref<2x64x256xf32, #tpu.memory_space<vmem>>, vector<2x64x256xf32>
    tpu.vector_store %arg4[%c0_14, %c0_15, %c0_16], %18 {strides = array<i32>} : memref<2x64x256xf32, #tpu.memory_space<vmem>>, vector<2x64x256xf32>,
    return
  }
  func.func @transform_0(%arg0: i32) -> (i32, i32, i32) {
    %c0_i32 = arith.constant 0 : i32
    %c0_i32_0 = arith.constant 0 : i32
    %c0_i32_1 = arith.constant 0 : i32
    return %arg0, %c0_i32, %c0_i32_0 : i32, i32, i32
  }
  func.func @transform_1(%arg0: i32) -> (i32, i32) {
    %c0_i32 = arith.constant 0 : i32
    %c0_i32_0 = arith.constant 0 : i32
    %c0_i32_1 = arith.constant 0 : i32
    return %c0_i32, %c0_i32_0 : i32, i32
  }
  func.func @transform_2(%arg0: i32) -> (i32, i32) {
    %c0_i32 = arith.constant 0 : i32
    %c0_i32_0 = arith.constant 0 : i32
    %c0_i32_1 = arith.constant 0 : i32
    return %c0_i32, %c0_i32_0 : i32, i32
  }
  func.func @transform_3(%arg0: i32) -> (i32, i32, i32) {
    %c0_i32 = arith.constant 0 : i32
    %c0_i32_0 = arith.constant 0 : i32
    %c0_i32_1 = arith.constant 0 : i32
    return %arg0, %c0_i32, %c0_i32_0 : i32, i32, i32
  }
}

</mosaic_0001>

<bundles_post_ra>
// kernel: tpu_custom_call.1
= control target key start
LH: loop header
LB: loop body
LE: loop exit
PB: predicated region body
PF: predicated region fallthrough
CT: control target
= control target key end

     0   :  { %8 = vsyncpa [#allocation3], 0  ;;  %s1507_s0 = inlined_call_operand.hbm [shape: f32[5,64,256], index: 0, kind: input, shape index: {}]   ;;  %s1508_s1 = inlined_call_operand.vmem [shape: f32[64,4], index: 1, kind: input, shape index: {}]   ;;  %s1509_s2 = inlined_call_operand.vmem [shape: f32[4,64], index: 2, kind: input, shape index: {}]   ;;  %s1510_s3 = inlined_call_operand.hbm [shape: f32[5,64,256], index: 3, kind: output, shape index: {}]  }
   0x1   :  { %10 = vsyncpa [#allocation3 + $0x1], 0 }
   0x2   :  { %11 = vsyncpa [#allocation4], 0 }
   0x3   :  { %13 = vsyncpa [#allocation4 + $0x1], 0  ;;  %s1088_s12 = smov 0   ;;  %s1090_s13 = smov 0  }
   0x4   :  { %s1092_s14 = smov 0   ;;  %s1094_s15 = smov 0  }
   0x5 LB: > { %s1109_s16 = sadd.s32 4294967295, %s1057_s15   ;;  %s820_s17 = sadd.s32 4294967294, %s1057_s15   ;;  %s1057_s15 = sphi %s1094_s15, %s1539_s15   ;;  %s1053_s14 = sphi %s1092_s14, %s1538_s14   ;;  %s1049_s13 = sphi %s1090_s13, %s1537_s13   ;;  %s1045_s12 = sphi %s1088_s12, %s1536_s12  }
   0x6   : > { %s1113_s18 = sadd.s32 1, %s1057_s15   ;;  %s26_s19 = sadd.s32 1, %s1053_s14 }
   0x7   : > { %s23_s20 = ssub.s32 %s1057_s15, %s1113_s18  ;;  %p33_p0 = scmp.ne.s32.totalorder %s1053_s14, %s1049_s13 }
   0x8   : > { %p24_p1 = scmp.eq.s32.totalorder %s23_s20, 0  ;;  %p34_p2 = scmp.eq.s32.totalorder %s1057_s15, 0 }
   0x9   : > { %p39_p3 = scmp.ne.s32.totalorder %s1049_s13, %s1045_s12  ;;  %p40_p4 = scmp.eq.s32.totalorder %s1109_s16, 0 }
   0xa   : > { %s1125_s21 = scalar_select %p24_p1, %s1053_s14, %s26_s19  }
   0xb   : > { %p35_p5 = por %p34_p2, %p33_p0  ;;  %p1127_p6 = por %p40_p4, %p39_p3 }
   0xc   : > { %p105_p7 = scmp.eq.s32.totalorder %s1109_s16, 2  ;;  %p111_p8 = scmp.eq.s32.totalorder %s820_s17, 2 }
   0xd   : > { %p822_p11 = scmp.ge.s32.totalorder %s1057_s15, 3 }
   0xe   : > { %p1132_p9 = por %p105_p7, %p33_p0  ;;  %p1136_p10 = por %p111_p8, %p39_p3 }
   0xf   : > { %133 = sbr.rel (%p822_p11) target bundleno = 57 (0x39), region = 24 }
  0x10   : > { %s1520_s24 = scalar_select %p1136_p10, 1, 0 }
  0x16   : > { %136 = sbr.rel (!%p35_p5) target bundleno = 57 (0x39), region = 28  ;;  %s137_s25 = sand.u32 (%p35_p5), 1, %s1053_s14  }
  0x17   : > { %s824_s26 = sshll.u32 (%p35_p5), %s1057_s15, 1  ;;  %s823_s27 = sshll.u32 (%p35_p5), %s137_s25, 8 }
  0x18   : > { %s143_s28 = ssub.s32 (%p35_p5), 5, %s824_s26  ;;  %s1146_s4 = scalar_lea.sflag (%p35_p5), [#allocation3], %s137_s25 }
  0x19   : > { %p144_p12 = scmp.lt.s32.totalorder (%p35_p5), %s143_s28, 2  ;;  %s141_s5 = scalar_lea.vmem (%p35_p5), [#allocation2], %s823_s27 }
  0x1d   : > { %s1541_s28 = smov (!%p144_p12, %s143_s28), 2 }
  0x1e   : > { %s1143_s29 = sshll.u32 %s1541_s28, 11 }
  0x1f   : > { %s150_s30 = ssub.s32 4096, %s1143_s29 }
  0x20   : > { %151 = vsyncadd %s1146_s4, %s150_s30  ;;  %p828_p13 = scmp.ne.s32.totalorder %s1143_s29, 0  ;;  %s857_s6 = sshll.u32 %s1057_s15, 12 }
  0x21   : > { %s1154_s9 = scalar_lea.hbm %s1507_s0, %s857_s6  ;;  %s158_s10 = sshll.u32 %s141_s5, 4  ;;  %s1156_s10 = int_to_ptr.vmem [resolvable:$true] %s158_s10 }
  0x22   : > { %s963_s11 = scalar_lea.hbm %s1154_s9, %s1143_s29  ;;  %s967_s20 = scalar_lea.hbm %s1507_s0, 10240 }
  0x23   : > { %p964_p0 = scmp.ne.s32.totalorder %s1154_s9, %s963_s11  ;;  %p968_p3 = scmp.lt.u32.totalorder %s1154_s9, %s1507_s0 }
  0x24   : > { %p969_p4 = scmp.lt.u32.totalorder %s967_s20, %s963_s11  ;;  %p971_p7 = scmp.lt.u32.totalorder %s963_s11, %s1154_s9 }
  0x25   : > { %p965_p1 = pnand %p964_p0, %p828_p13 }
  0x26   : > { %p970_p5 = por %p969_p4, %p968_p3 }
  0x27   : > { %p966_p2 = pneg %p965_p1 }
  0x28   : > { %p972_p8 = por %p971_p7, %p970_p5 }
  0x2a   : > { %p973_p11 = pnand %p972_p8, %p966_p2 }
  0x2c   : > { %976 = shalt.err (!%p973_p11)
}
  0x2d   : > { %s977_s27 = scalar_lea.vmem %s1156_s10, %s1143_s29  ;;  %s1059_s28 = smov [#allocation2]  }
  0x2e   : > { %p978_p12 = scmp.ne.s32.totalorder %s1156_s10, %s977_s27  ;;  %s981_s30 = sshll.u32 %s1059_s28, 4  ;;  %s982_s30 = int_to_ptr.vmem [resolvable:$false] %s981_s30 }
  0x2f   : > { %s983_s5 = scalar_lea.vmem %s982_s30, 8192  ;;  %p984_p10 = scmp.lt.s32.totalorder %s1156_s10, %s982_s30 }
  0x30   : > { %p979_p0 = pnand %p978_p12, %p828_p13  ;;  %p985_p3 = scmp.lt.s32.totalorder %s983_s5, %s977_s27 }
  0x32   : > { %p980_p1 = pneg %p979_p0  ;;  %p986_p4 = por %p985_p3, %p984_p10 }
  0x34   : > { %p987_p5 = pnand %p986_p4, %p980_p1 }
  0x36   : > { %990 = shalt.err (!%p987_p5)
}
  0x37   : > { %s1060_s6 = smov 256   ;;  %s1061_s7 = smov 16  }
  0x38   : > { %164 = dma.hbm_to_vmem [thread:$0]  (%p828_p13), %s1154_s9, %s1143_s29, %s1156_s10, %s1146_s4, %s1060_s6, %s1060_s6, %s1061_s7  }
  0x39 PF: > { %p834_p2 = scmp.ge.s32.totalorder %s1057_s15, 1  ;;  %p166_p7 = scmp.lt.s32.totalorder %s1057_s15, 4 }
  0x3b   : > { %p167_p8 = pnand %p834_p2, %p166_p7 }
  0x3d   : > { %170 = sbr.rel (%p167_p8) target bundleno = 884 (0x374), region = 32 }
  0x44   : > { %s1186_s8 = sand.u32 1, %s1049_s13  }
  0x45   : > { %s835_s11 = sshll.u32 %s1186_s8, 8  ;;  %s173_s17 = scalar_lea.sflag [#allocation3], %s1186_s8 }
  0x46   : > { %s1192_s19 = scalar_lea.vmem [#allocation2], %s835_s11 }
  0x47   : > { %1036 = dma.done.wait (%p1127_p6), %s173_s17, 4096  }
  0x48   : > { %1038 = vsyncadd (%p1127_p6), %s173_s17, 4294963200  ;;  %v1199_v0 = vld [vmem:[%s1192_s19 + $0x80] sm:$0xff]  ;;  %v1202_v1 = vld [vmem:[%s1192_s19 + $0x88] sm:$0xff]  ;;  %v1062_v51 = vmov 0.0|0.0   ;;  %vm1063_vm0 = vmmov 0   ;;  %v1064_v61 = vmov 0.0  }
  0x49   : > { %v1205_v2 = vld [vmem:[%s1192_s19] sm:$0xff]  ;;  %v269_v3 = vadd.f32 %v1202_v1, %v1199_v0  ;;  %v1210_v4 = vld [vmem:[%s1192_s19 + $0x8] sm:$0xff]  ;;  %v1213_v5 = vld [vmem:[%s1192_s19 + $0x90] sm:$0xff]  ;;  %901 = vmatprep.subr.bf16.mxu0 %v1062_v51  ;;  %893 = vmatprep.mubr.msk.f32.mxu0 %vm1063_vm0, %v1064_v61  ;;  %vm345_vm1 = vcmask 130112   ;;  %vm352_vm2 = vcmask 195712   ;;  %vm359_vm3 = vcmask 261312  }
  0x4a   : > { %v1216_v6 = vld [vmem:[%s1192_s19 + $0x98] sm:$0xff]  ;;  %v245_v7 = vadd.f32 %v1210_v4, %v1205_v2  ;;  %v1221_v8 = vld [vmem:[%s1192_s19 + $0x10] sm:$0xff]  ;;  %v1231_v12 = vld [vmem:[%s1192_s19 + $0xa0] sm:$0xff]  ;;  %896 = vmatprep.subr.mxu1 %v1064_v61  ;;  %898 = vmatprep.mubr.msk.f32.mxu1 %vm1063_vm0, %v1064_v61  ;;  %vm366_vm4 = vcmask 326912   ;;  %vm373_vm5 = vcmask 392512   ;;  %vm380_vm6 = vcmask 458112  }
  0x4b   : > { %v1224_v9 = vld [vmem:[%s1192_s19 + $0x18] sm:$0xff]  ;;  %270 = vadd.xlane.f32.xlu1 %v269_v3  ;;  %v272_v10 = vadd.f32 %v1216_v6, %v1213_v5  ;;  %v1234_v13 = vld [vmem:[%s1192_s19 + $0xa8] sm:$0xff]  ;;  %v1237_v14 = vld [vmem:[%s1192_s19 + $0x20] sm:$0xff]  ;;  %vm387_vm7 = vcmask 523712   ;;  %vm428_vm8 = vcmask 1041409   ;;  %vm430_vm9 = vcmask 523264  }
  0x4c   : > { %246 = vadd.xlane.f32.xlu0 %v245_v7  ;;  %v248_v11 = vadd.f32 %v1224_v9, %v1221_v8  ;;  %v1240_v15 = vld [vmem:[%s1192_s19 + $0x28] sm:$0xff]  ;;  %v275_v16 = vadd.f32 %v1234_v13, %v1231_v12  ;;  %v1247_v18 = vld [vmem:[%s1192_s19 + $0xb0] sm:$0xff]  ;;  %v1250_v19 = vld [vmem:[%s1192_s19 + $0xb8] sm:$0xff]  ;;  %vm509_vm10 = vcmask 1043456   ;;  %vm505_vm11 = vcmask 31744   ;;  %s1383_s4 = scalar_lea.vmem [#allocation5], %s835_s11 }
  0x4d   : > { %v251_v17 = vadd.f32 %v1240_v15, %v1237_v14  ;;  %1521 = vst [vmem:[#allocation8_spill] sm:$0xff] %v1250_v19  ;;  %v1253_v20 = vld [vmem:[%s1192_s19 + $0x30] sm:$0xff]  ;;  %v1256_v21 = vld [vmem:[%s1192_s19 + $0x38] sm:$0xff]  ;;  %v278_v22 = vadd.f32 %v1250_v19, %v1247_v18  ;;  %v1263_v24 = vld [vmem:[%s1192_s19 + $0xc0] sm:$0xff]  ;;  %s724_s11 = scalar_lea.sflag [#allocation4], %s1186_s8  ;;  %s842_s9 = sshll.u32 (%p1132_p9), %s1109_s16, 1 }
  0x4e   : > { %v254_v23 = vadd.f32 %v1256_v21, %v1253_v20  ;;  %v1266_v25 = vld [vmem:[%s1192_s19 + $0xc8] sm:$0xff]  ;;  %v1269_v26 = vld [vmem:[%s1192_s19 + $0x40] sm:$0xff]  ;;  %v1279_v30 = vld [vmem:[%s1192_s19 + $0xd0] sm:$0xff]  ;;  %s732_s10 = ssub.s32 (%p1132_p9), 5, %s842_s9 }
  0x4f   : > { %273 = vadd.xlane.f32.xlu1 %v272_v10  ;;  %v1272_v27 = vld [vmem:[%s1192_s19 + $0x48] sm:$0xff]  ;;  %v281_v28 = vadd.f32 %v1266_v25, %v1263_v24  ;;  %1522 = vst [vmem:[#allocation9_spill] sm:$0xff] %v1279_v30  ;;  %v1282_v31 = vld [vmem:[%s1192_s19 + $0xd8] sm:$0xff]  ;;  %v1285_v32 = vld [vmem:[%s1192_s19 + $0x50] sm:$0xff]  ;;  %v334_v10 = vlaneseq  ;;  %p733_p6 = scmp.lt.s32.totalorder (%p1132_p9), %s732_s10, 2 }
  0x50   : > { %249 = vadd.xlane.f32.xlu0 %v248_v11  ;;  %v257_v29 = vadd.f32 %v1272_v27, %v1269_v26  ;;  %1523 = vst [vmem:[#allocation10_spill] sm:$0xff] %v1282_v31  ;;  %v1288_v33 = vld [vmem:[%s1192_s19 + $0x58] sm:$0xff]  ;;  %v284_v34 = vadd.f32 %v1282_v31, %v1279_v30  ;;  %v1295_v36 = vld [vmem:[%s1192_s19 + $0xe0] sm:$0xff]  ;;  %v1298_v37 = vld [vmem:[%s1192_s19 + $0xe8] sm:$0xff] }
  0x51   : > { %v260_v35 = vadd.f32 %v1288_v33, %v1285_v32  ;;  %1524 = vst [vmem:[#allocation11_spill] sm:$0xff] %v1295_v36  ;;  %1525 = vst [vmem:[#allocation12_spill] sm:$0xff] %v1298_v37  ;;  %v1301_v38 = vld [vmem:[%s1192_s19 + $0x60] sm:$0xff]  ;;  %v1304_v39 = vld [vmem:[%s1192_s19 + $0x68] sm:$0xff]  ;;  %v287_v40 = vadd.f32 %v1298_v37, %v1295_v36 }
  0x52   : > { %v263_v41 = vadd.f32 %v1304_v39, %v1301_v38  ;;  %v1311_v42 = vld [vmem:[%s1192_s19 + $0xf0] sm:$0xff]  ;;  %v1314_v43 = vld [vmem:[%s1192_s19 + $0xf8] sm:$0xff]  ;;  %v310_v48 = vld [vmem:[%s1508_s1] sm:$0xff] }
  0x53   : > { %276 = vadd.xlane.f32.xlu1 %v275_v16  ;;  %1526 = vst [vmem:[#allocation13_spill] sm:$0xff] %v1311_v42  ;;  %1527 = vst [vmem:[#allocation14_spill] sm:$0xff] %v1314_v43  ;;  %v1317_v44 = vld [vmem:[%s1192_s19 + $0x70] sm:$0xff]  ;;  %v1320_v45 = vld [vmem:[%s1192_s19 + $0x78] sm:$0xff]  ;;  %v290_v46 = vadd.f32 %v1314_v43, %v1311_v42 }
  0x54   : > { %252 = vadd.xlane.f32.xlu0 %v251_v17  ;;  %v266_v47 = vadd.f32 %v1320_v45, %v1317_v44  ;;  %v311_v49 = vld [vmem:[%s1508_s1 + $0x8] sm:$0xff]  ;;  %v312_v52 = vld [vmem:[%s1508_s1 + $0x10] sm:$0xff]  ;;  %v313_v53 = vld [vmem:[%s1508_s1 + $0x18] sm:$0xff]  ;;  %v335_v17 = vand.u32 127, %v334_v10 }
  0x55   : > { %v902_v50 = vpack.c.bf16 %v311_v49, %v310_v48  ;;  %v905_v54 = vpack.c.bf16 %v313_v53, %v312_v52  ;;  %v314_v55 = vld [vmem:[%s1508_s1 + $0x20] sm:$0xff]  ;;  %v315_v56 = vld [vmem:[%s1508_s1 + $0x28] sm:$0xff]  ;;  %v316_v58 = vld [vmem:[%s1508_s1 + $0x30] sm:$0xff] }
  0x56   : > { %v908_v57 = vpack.c.bf16 %v315_v56, %v314_v55  ;;  %v317_v59 = vld [vmem:[%s1508_s1 + $0x38] sm:$0xff] }
  0x57   : > { %279 = vadd.xlane.f32.xlu1 %v278_v22  ;;  %903 = vmatpush3.bf16.msra.mxu0 %v902_v50  ;;  %v911_v60 = vpack.c.bf16 %v317_v59, %v316_v58 }
  0x58   : > { %255 = vadd.xlane.f32.xlu0 %v254_v23  ;;  %904 = vmatprep.subr.bf16.mxu0 %v1062_v51  ;;  %v1350_v23 = vshrl.u32 %v334_v10, 7 }
  0x5b   : > { %282 = vadd.xlane.f32.xlu1 %v281_v28  ;;  %906 = vmatpush3.bf16.msra.mxu0 %v905_v54 }
  0x5c   : > { %258 = vadd.xlane.f32.xlu0 %v257_v29  ;;  %907 = vmatprep.subr.bf16.mxu0 %v1062_v51  ;;  %v340_v29 = vadd.s32 4294967288, %v335_v17 }
  0x5e   : > { %v343_v49 = vsub.s32 %v340_v29, %v1350_v23 }
  0x5f   : > { %285 = vadd.xlane.f32.xlu1 %v284_v34  ;;  %909 = vmatpush3.bf16.msra.mxu0 %v908_v57  ;;  %v347_v34 = vadd.s32 4294967280, %v335_v17 }
  0x60   : > { %261 = vadd.xlane.f32.xlu0 %v260_v35  ;;  %910 = vmatprep.subr.bf16.mxu0 %v1062_v51  ;;  %v354_v35 = vadd.s32 4294967272, %v335_v17  ;;  %v375_v51 = vadd.s32 4294967248, %v335_v17 }
  0x61   : > { %v350_v50 = vsub.s32 %v347_v34, %v1350_v23 }
  0x62   : > { %v357_v53 = vsub.s32 %v354_v35, %v1350_v23 }
  0x63   : > { %288 = vadd.xlane.f32.xlu1 %v287_v40  ;;  %912 = vmatpush3.bf16.msra.mxu0 %v911_v60  ;;  %v361_v40 = vadd.s32 4294967264, %v335_v17 }
  0x64   : > { %264 = vadd.xlane.f32.xlu0 %v263_v41 }
  0x65   : > { %v364_v54 = vsub.s32 %v361_v40, %v1350_v23  ;;  %v382_v40 = vadd.s32 4294967240, %v335_v17 }
  0x67   : > { %291 = vadd.xlane.f32.xlu1 %v290_v46  ;;  %v368_v46 = vadd.s32 4294967256, %v335_v17 }
  0x68   : > { %267 = vadd.xlane.f32.xlu0 %v266_v47  ;;  %v338_v47 = vsub.s32 %v335_v17, %v1350_v23  ;;  %v385_v17 = vsub.s32 %v382_v40, %v1350_v23 }
  0x69   : > { %v371_v57 = vsub.s32 %v368_v46, %v1350_v23 }
  0xd8   : > { %v271_v62 = vpop.xlane.xlu1 %270 }
  0xd9   : > { %v247_v63 = vpop.xlane.xlu0 %246  ;;  %v302_v59 = vmul.f32 0.00390625, %v271_v62 }
  0xda   : > { %v294_v29 = vmul.f32 0.00390625, %v247_v63 }
  0xdb   : > { %v392_v37 = vrot.slane %v302_v59, %v338_v47 }
  0xdc   : > { %v274_v3 = vpop.xlane.xlu1 %273  ;;  %v339_v19 = vrot.slane %v294_v29, %v338_v47 }
  0xdd   : > { %v250_v7 = vpop.xlane.xlu0 %249  ;;  %v303_v52 = vmul.f32 0.00390625, %v274_v3  ;;  %v378_v3 = vsub.s32 %v375_v51, %v1350_v23 }
  0xde   : > { %v295_v55 = vmul.f32 0.00390625, %v250_v7 }
  0xdf   : > { %v396_v35 = vrot.slane %v303_v52, %v343_v49 }
  0xe0   : > { %v277_v11 = vpop.xlane.xlu1 %276  ;;  %v344_v7 = vrot.slane %v295_v55, %v343_v49 }
  0xe1   : > { %v253_v16 = vpop.xlane.xlu0 %252  ;;  %v304_v56 = vmul.f32 0.00390625, %v277_v11  ;;  %v397_v51 = vsel %vm345_vm1, %v396_v35, %v392_v37  ;;  %v504_v35 = vld [vmem:[%s1509_s2] sm:$0xf] }
  0xe2   : > { %v296_v60 = vmul.f32 0.00390625, %v253_v16  ;;  %v346_v49 = vsel %vm345_vm1, %v344_v7, %v339_v19  ;;  %897 = vmatpush3.msk.msra.mxu1 %vm509_vm10, %v504_v35 }
  0xe3   : > { %v401_v11 = vrot.slane %v304_v56, %v350_v50 }
  0xe4   : > { %v280_v22 = vpop.xlane.xlu1 %279  ;;  %v351_v62 = vrot.slane %v296_v60, %v350_v50 }
  0xe5   : > { %v256_v28 = vpop.xlane.xlu0 %255  ;;  %v305_v61 = vmul.f32 0.00390625, %v280_v22  ;;  %v402_v55 = vsel %vm352_vm2, %v401_v11, %v397_v51 }
  0xe6   : > { %v297_v34 = vmul.f32 0.00390625, %v256_v28  ;;  %v353_v59 = vsel %vm352_vm2, %v351_v62, %v346_v49 }
  0xe7   : > { %v406_v16 = vrot.slane %v305_v61, %v357_v53 }
  0xe8   : > { %v283_v41 = vpop.xlane.xlu1 %282  ;;  %v358_v63 = vrot.slane %v297_v34, %v357_v53 }
  0xe9   : > { %v259_v48 = vpop.xlane.xlu0 %258  ;;  %v306_v43 = vmul.f32 0.00390625, %v283_v41  ;;  %v407_v47 = vsel %vm359_vm3, %v406_v16, %v402_v55 }
  0xea   : > { %v298_v42 = vmul.f32 0.00390625, %v259_v48  ;;  %v360_v37 = vsel %vm359_vm3, %v358_v63, %v353_v59 }
  0xeb   : > { %v411_v28 = vrot.slane %v306_v43, %v364_v54 }
  0xec   : > { %v286_v58 = vpop.xlane.xlu1 %285  ;;  %v365_v52 = vrot.slane %v298_v42, %v364_v54 }
  0xed   : > { %v262_v10 = vpop.xlane.xlu0 %261  ;;  %v307_v31 = vmul.f32 0.00390625, %v286_v58 }
  0xee   : > { %v299_v30 = vmul.f32 0.00390625, %v262_v10  ;;  %v367_v19 = vsel %vm366_vm4, %v365_v52, %v360_v37  ;;  %v626_v52 = vsub.s32 1, %v1350_v23 }
  0xef   : > { %v416_v48 = vrot.slane %v307_v31, %v371_v57  ;;  %v412_v31 = vsel %vm366_vm4, %v411_v28, %v407_v47  ;;  %v591_v28 = vsub.s32 0, %v1350_v23 }
  0xf0   : > { %v289_v46 = vpop.xlane.xlu1 %288  ;;  %v372_v56 = vrot.slane %v299_v30, %v371_v57 }
  0xf1   : > { %v308_v22 = vmul.f32 0.00390625, %v289_v46  ;;  %v265_v36 = vpop.xlane.xlu0 %264  ;;  %v417_v54 = vsel %vm373_vm5, %v416_v48, %v412_v31 }
  0xf2   : > { %v300_v41 = vmul.f32 0.00390625, %v265_v36  ;;  %v374_v57 = vsel %vm373_vm5, %v372_v56, %v367_v19 }
  0xf3   : > { %v421_v58 = vrot.slane %v308_v22, %v378_v3 }
  0xf4   : > { %v292_v50 = vpop.xlane.xlu1 %291  ;;  %v379_v53 = vrot.slane %v300_v41, %v378_v3 }
  0xf5   : > { %v309_v43 = vmul.f32 0.00390625, %v292_v50  ;;  %v268_v36 = vpop.xlane.xlu0 %267  ;;  %v422_v60 = vsel %vm380_vm6, %v421_v58, %v417_v54 }
  0xf6   : > { %v301_v42 = vmul.f32 0.00390625, %v268_v36  ;;  %v381_v10 = vsel %vm380_vm6, %v379_v53, %v374_v57 }
  0xf7   : > { %v426_v30 = vrot.slane %v309_v43, %v385_v17 }
  0xf8   : > { %v386_v61 = vrot.slane %v301_v42, %v385_v17 }
  0xf9   : > { %v427_v29 = vsel %vm387_vm7, %v426_v30, %v422_v60  ;;  %v1528_v60 = vld [vmem:[#allocation8_spill] sm:$0xff] }
  0xfa   : > { %v388_v34 = vsel %vm387_vm7, %v386_v61, %v381_v10  ;;  %v1529_v61 = vld [vmem:[#allocation11_spill] sm:$0xff]  ;;  %v1530_v10 = vld [vmem:[#allocation12_spill] sm:$0xff] }
  0xfb   : > { %v429_v3 = vsel %vm428_vm8, %v427_v29, %v388_v34  ;;  %v1531_v29 = vld [vmem:[#allocation9_spill] sm:$0xff] }
  0xfc   : > { %894 = vmatmul.mubr.msk.f32.vlgmr.msra.gmra.mrb[0].mxu0 %vm430_vm9, %v429_v3  ;;  %v1532_v3 = vld [vmem:[#allocation10_spill] sm:$0xff] }
 0x1cf   : > { %v499_v40 = vpop.f32.mrb[0].mxu0 }
 0x1d0   : > { %v503_v7 = vmax.f32 %v499_v40, 0.0  ;;  %v895_v11 = vpop.f32.mrb[1].mxu0  ;;  %v1533_v40 = vld [vmem:[#allocation13_spill] sm:$0xff] }
 0x1d1   : > { %v1534_v11 = vld [vmem:[#allocation14_spill] sm:$0xff] }
 0x1d2   : > { %899 = vmatmul.mubr.msk.f32.vlgmr.msra.gmra.mrb[0].mxu1 %vm505_vm11, %v503_v7 }
 0x2a5   : > { %v579_v46 = vpop.f32.mrb[0].mxu1 }
 0x2a6   : > { %v840_v62 = vmul.f32 -1.442695, %v579_v46  ;;  %v900_v16 = vpop.f32.mrb[1].mxu1 }
 0x2a8   : > { %959 = vpow2.f32 %v840_v62 }
 0x2b2   : > { %v960_v22 = vpop.eup %959 }
 0x2b3   : > { %v586_v63 = vadd.f32 1.0, %v960_v22 }
 0x2b5   : > { %961 = vrcp.f32 %v586_v63 }
 0x2bf   : > { %v962_v41 = vpop.eup %961 }
 0x2c0   : > { %v592_v51 = vrot.slane %v962_v41, %v591_v28  ;;  %v627_v48 = vrot.slane %v962_v41, %v626_v52 }
 0x2c2   : > { %598 = vbcast.lane.b32.xlu1 %v592_v51, 264  ;;  %594 = vbcast.lane.b32.xlu0 %v592_v51, 256 }
 0x2c6   : > { %602 = vbcast.lane.b32.xlu1 %v592_v51, 272  ;;  %610 = vbcast.lane.b32.xlu0 %v592_v51, 288 }
 0x2ca   : > { %606 = vbcast.lane.b32.xlu1 %v592_v51, 280  ;;  %618 = vbcast.lane.b32.xlu0 %v592_v51, 304 }
 0x2ce   : > { %614 = vbcast.lane.b32.xlu1 %v592_v51, 296  ;;  %629 = vbcast.lane.b32.xlu0 %v627_v48, 256 }
 0x2d2   : > { %622 = vbcast.lane.b32.xlu1 %v592_v51, 312  ;;  %637 = vbcast.lane.b32.xlu0 %v627_v48, 272 }
 0x2d6   : > { %633 = vbcast.lane.b32.xlu1 %v627_v48, 264  ;;  %645 = vbcast.lane.b32.xlu0 %v627_v48, 288 }
 0x2da   : > { %641 = vbcast.lane.b32.xlu1 %v627_v48, 280  ;;  %653 = vbcast.lane.b32.xlu0 %v627_v48, 304 }
 0x2de   : > { %649 = vbcast.lane.b32.xlu1 %v627_v48, 296 }
 0x2e2   : > { %657 = vbcast.lane.b32.xlu1 %v627_v48, 312 }
 0x334   : > { %v599_v17 = vpop.permute.xlu1 %598  ;;  %v595_v49 = vpop.permute.xlu0 %594 }
 0x335   : > { %v661_v55 = vmul.f32 %v599_v17, %v1221_v8  ;;  %v662_v23 = vmul.f32 %v599_v17, %v1224_v9  ;;  %v659_v56 = vmul.f32 %v595_v49, %v1205_v2  ;;  %v660_v58 = vmul.f32 %v595_v49, %v1210_v4 }
 0x337   : > { %693 = vst [vmem:[%s1383_s4 + $0x10] sm:$0xff] %v661_v55  ;;  %694 = vst [vmem:[%s1383_s4 + $0x18] sm:$0xff] %v662_v23 }
 0x338   : > { %691 = vst [vmem:[%s1383_s4] sm:$0xff] %v659_v56  ;;  %692 = vst [vmem:[%s1383_s4 + $0x8] sm:$0xff] %v660_v58  ;;  %v603_v8 = vpop.permute.xlu1 %602  ;;  %v611_v2 = vpop.permute.xlu0 %610 }
 0x339   : > { %v663_v4 = vmul.f32 %v603_v8, %v1237_v14  ;;  %v664_v9 = vmul.f32 %v603_v8, %v1240_v15  ;;  %v667_v50 = vmul.f32 %v611_v2, %v1269_v26  ;;  %v668_v59 = vmul.f32 %v611_v2, %v1272_v27 }
 0x33b   : > { %695 = vst [vmem:[%s1383_s4 + $0x20] sm:$0xff] %v663_v4  ;;  %696 = vst [vmem:[%s1383_s4 + $0x28] sm:$0xff] %v664_v9 }
 0x33c   : > { %699 = vst [vmem:[%s1383_s4 + $0x40] sm:$0xff] %v667_v50  ;;  %700 = vst [vmem:[%s1383_s4 + $0x48] sm:$0xff] %v668_v59  ;;  %v607_v47 = vpop.permute.xlu1 %606  ;;  %v619_v53 = vpop.permute.xlu0 %618 }
 0x33d   : > { %v665_v43 = vmul.f32 %v607_v47, %v1253_v20  ;;  %v666_v14 = vmul.f32 %v607_v47, %v1256_v21  ;;  %v671_v15 = vmul.f32 %v619_v53, %v1301_v38  ;;  %v672_v26 = vmul.f32 %v619_v53, %v1304_v39 }
 0x33f   : > { %697 = vst [vmem:[%s1383_s4 + $0x30] sm:$0xff] %v665_v43  ;;  %698 = vst [vmem:[%s1383_s4 + $0x38] sm:$0xff] %v666_v14 }
 0x340   : > { %703 = vst [vmem:[%s1383_s4 + $0x60] sm:$0xff] %v671_v15  ;;  %704 = vst [vmem:[%s1383_s4 + $0x68] sm:$0xff] %v672_v26  ;;  %v615_v27 = vpop.permute.xlu1 %614  ;;  %v630_v36 = vpop.permute.xlu0 %629 }
 0x341   : > { %v669_v37 = vmul.f32 %v615_v27, %v1285_v32  ;;  %v670_v20 = vmul.f32 %v615_v27, %v1288_v33  ;;  %v675_v21 = vmul.f32 %v630_v36, %v1199_v0  ;;  %v676_v38 = vmul.f32 %v630_v36, %v1202_v1 }
 0x343   : > { %701 = vst [vmem:[%s1383_s4 + $0x50] sm:$0xff] %v669_v37  ;;  %702 = vst [vmem:[%s1383_s4 + $0x58] sm:$0xff] %v670_v20 }
 0x344   : > { %707 = vst [vmem:[%s1383_s4 + $0x80] sm:$0xff] %v675_v21  ;;  %708 = vst [vmem:[%s1383_s4 + $0x88] sm:$0xff] %v676_v38  ;;  %v623_v39 = vpop.permute.xlu1 %622  ;;  %v638_v31 = vpop.permute.xlu0 %637 }
 0x345   : > { %v673_v42 = vmul.f32 %v623_v39, %v1317_v44  ;;  %v674_v32 = vmul.f32 %v623_v39, %v1320_v45  ;;  %v679_v33 = vmul.f32 %v638_v31, %v1231_v12  ;;  %v680_v0 = vmul.f32 %v638_v31, %v1234_v13 }
 0x347   : > { %705 = vst [vmem:[%s1383_s4 + $0x70] sm:$0xff] %v673_v42  ;;  %706 = vst [vmem:[%s1383_s4 + $0x78] sm:$0xff] %v674_v32 }
 0x348   : > { %711 = vst [vmem:[%s1383_s4 + $0xa0] sm:$0xff] %v679_v33  ;;  %712 = vst [vmem:[%s1383_s4 + $0xa8] sm:$0xff] %v680_v0  ;;  %v634_v1 = vpop.permute.xlu1 %633  ;;  %v646_v19 = vpop.permute.xlu0 %645 }
 0x349   : > { %v677_v54 = vmul.f32 %v634_v1, %v1213_v5  ;;  %v678_v44 = vmul.f32 %v634_v1, %v1216_v6  ;;  %v683_v45 = vmul.f32 %v646_v19, %v1263_v24  ;;  %v684_v12 = vmul.f32 %v646_v19, %v1266_v25 }
 0x34b   : > { %709 = vst [vmem:[%s1383_s4 + $0x90] sm:$0xff] %v677_v54  ;;  %710 = vst [vmem:[%s1383_s4 + $0x98] sm:$0xff] %v678_v44 }
 0x34c   : > { %715 = vst [vmem:[%s1383_s4 + $0xc0] sm:$0xff] %v683_v45  ;;  %716 = vst [vmem:[%s1383_s4 + $0xc8] sm:$0xff] %v684_v12  ;;  %v642_v13 = vpop.permute.xlu1 %641  ;;  %v654_v30 = vpop.permute.xlu0 %653 }
 0x34d   : > { %v681_v57 = vmul.f32 %v642_v13, %v1247_v18  ;;  %v682_v5 = vmul.f32 %v642_v13, %v1528_v60  ;;  %v687_v6 = vmul.f32 %v654_v30, %v1529_v61  ;;  %v688_v24 = vmul.f32 %v654_v30, %v1530_v10 }
 0x34f   : > { %713 = vst [vmem:[%s1383_s4 + $0xb0] sm:$0xff] %v681_v57  ;;  %714 = vst [vmem:[%s1383_s4 + $0xb8] sm:$0xff] %v682_v5 }
 0x350   : > { %719 = vst [vmem:[%s1383_s4 + $0xe0] sm:$0xff] %v687_v6  ;;  %720 = vst [vmem:[%s1383_s4 + $0xe8] sm:$0xff] %v688_v24  ;;  %v650_v25 = vpop.permute.xlu1 %649 }
 0x351   : > { %v685_v34 = vmul.f32 %v650_v25, %v1531_v29  ;;  %v686_v35 = vmul.f32 %v650_v25, %v1532_v3  ;;  %730 = sbr.rel (!%p1132_p9) target bundleno = 884 (0x374), region = 40 }
 0x353   : > { %717 = vst [vmem:[%s1383_s4 + $0xd0] sm:$0xff] %v685_v34  ;;  %718 = vst [vmem:[%s1383_s4 + $0xd8] sm:$0xff] %v686_v35 }
 0x354   : > { %v658_v18 = vpop.permute.xlu1 %657 }
 0x355   : > { %v689_v7 = vmul.f32 %v658_v18, %v1533_v40  ;;  %v690_v46 = vmul.f32 %v658_v18, %v1534_v11 }
 0x357   : > { %721 = vst [vmem:[%s1383_s4 + $0xf0] sm:$0xff] %v689_v7  ;;  %722 = vst [vmem:[%s1383_s4 + $0xf8] sm:$0xff] %v690_v46 }
 0x358   : > { %s1543_s10 = smov (!%p733_p6, %s732_s10), 2 }
 0x359   : > { %s1449_s20 = sshll.u32 %s1543_s10, 11 }
 0x35a   : > { %s739_s25 = ssub.s32 4096, %s1449_s20 }
 0x35b   : > { %740 = vsyncadd %s724_s11, %s739_s25  ;;  %p846_p10 = scmp.ne.s32.totalorder %s1449_s20, 0  ;;  %s863_s23 = sshll.u32 %s1109_s16, 12 }
 0x35c   : > { %s1459_s28 = scalar_lea.hbm %s1510_s3, %s863_s23  ;;  %s747_s30 = sshll.u32 %s1383_s4, 4  ;;  %s1462_s30 = int_to_ptr.vmem [resolvable:$true] %s747_s30 }
 0x35d   : > { %s991_s5 = scalar_lea.vmem %s1462_s30, %s1449_s20  ;;  %s1065_s6 = smov [#allocation5]  }
 0x35e   : > { %p992_p9 = scmp.ne.s32.totalorder %s1462_s30, %s991_s5  ;;  %s995_s7 = sshll.u32 %s1065_s6, 4  ;;  %s996_s7 = int_to_ptr.vmem [resolvable:$false] %s995_s7 }
 0x35f   : > { %s997_s16 = scalar_lea.vmem %s996_s7, 8192  ;;  %p998_p12 = scmp.lt.s32.totalorder %s1462_s30, %s996_s7 }
 0x360   : > { %p993_p13 = pnand %p992_p9, %p846_p10  ;;  %p999_p0 = scmp.lt.s32.totalorder %s997_s16, %s991_s5 }
 0x362   : > { %p994_p11 = pneg %p993_p13  ;;  %p1000_p1 = por %p999_p0, %p998_p12 }
 0x364   : > { %p1001_p3 = pnand %p1000_p1, %p994_p11 }
 0x366   : > { %1004 = shalt.err (!%p1001_p3)
}
 0x367   : > { %s1005_s17 = scalar_lea.hbm %s1459_s28, %s1449_s20  ;;  %s1009_s29 = scalar_lea.hbm %s1510_s3, 10240 }
 0x368   : > { %p1006_p4 = scmp.ne.s32.totalorder %s1459_s28, %s1005_s17  ;;  %p1010_p7 = scmp.lt.u32.totalorder %s1459_s28, %s1510_s3 }
 0x369   : > { %p1011_p8 = scmp.lt.u32.totalorder %s1009_s29, %s1005_s17  ;;  %p1013_p9 = scmp.lt.u32.totalorder %s1005_s17, %s1459_s28 }
 0x36a   : > { %p1007_p5 = pnand %p1006_p4, %p846_p10 }
 0x36b   : > { %p1012_p6 = por %p1011_p8, %p1010_p7 }
 0x36c   : > { %p1008_p2 = pneg %p1007_p5 }
 0x36d   : > { %p1014_p13 = por %p1013_p9, %p1012_p6 }
 0x36f   : > { %p1015_p11 = pnand %p1014_p13, %p1008_p2 }
 0x371   : > { %1018 = shalt.err (!%p1015_p11)
}
 0x372   : > { %s1066_s10 = smov 256   ;;  %s1067_s25 = smov 16  }
 0x373   : > { %753 = dma.vmem_to_hbm [thread:$0]  (%p846_p10), %s1462_s30, %s1449_s20, %s1459_s28, %s724_s11, %s1066_s10, %s1066_s10, %s1067_s25  }
 0x374 PF: > { %p919_p12 = scmp.ge.s32.totalorder %s1057_s15, 2  ;;  %s762_s23 = sand.u32 1, %s1045_s12  }
 0x375   : > { %p1535_p0 = scmp.ne.s32.totalorder %s1520_s24, 0  ;;  %s763_s26 = scalar_lea.sflag [#allocation4], %s762_s23 }
 0x377   : > { %p916_p1 = pnand %p919_p12, %p1535_p0 }
 0x379   : > { %1040 = dma.done.wait (!%p916_p1), %s763_s26, 4096  }
 0x37a   : > { %1042 = vsyncadd (!%p916_p1), %s763_s26, 4294963200  ;;  %p16_p3 = scmp.ge.s32.totalorder %s1113_s18, 5   ;;  %s1536_s12 = smov %s1049_s13 }
 0x37b   : > { %s1537_s13 = smov %s1053_s14  ;;  %s1538_s14 = smov %s1125_s21 }
 0x37c   : > { %s1539_s15 = smov %s1113_s18  ;;  %18 = sbr.rel (!%p16_p3) target bundleno = 5 (0x5), region = 77 }
 0x383   :  { %768 = vsyncpa [#allocation3], 1 }
 0x384   :  { %770 = vsyncpa [#allocation3 + $0x1], 1 }
 0x385   :  { %771 = vsyncpa [#allocation4], 1 }
 0x386   :  { %773 = vsyncpa [#allocation4 + $0x1], 1 }

</bundles_post_ra>
